<compile_context>
chip_gen: v7x
topology: tpu7x:2x2x1
jax: 0.10.0
libtpu: 0.0.40
codegen_flags: <defaults>
</compile_context>

<pallas_src>
from typing import NamedTuple

import jax
import jax.numpy as jnp
from jax.experimental import pallas as pl
from jax.experimental.pallas import tpu as pltpu

NEG_SLOPE = 0.01  # torch.nn.LeakyReLU default negative_slope


def _leaky_relu(x):
    return jnp.where(x > 0, x, NEG_SLOPE * x)


def _round_up(x, m):
    return (x + m - 1) // m * m


def _cdiv(a, b):
    return (a + b - 1) // b


# --------------------------------------------------------------------------- #
# Parameters: pad + cast ONCE (hoisted out of the per-call path).
# --------------------------------------------------------------------------- #
class ResidualBlockParams(NamedTuple):
    w1: jax.Array   # (d_pad, d_pad), [in, out], mxu dtype
    b1: jax.Array   # (1, d_pad), f32
    w2: jax.Array   # (d_pad, d_pad), [in, out], mxu dtype
    b2: jax.Array   # (1, d_pad), f32
    dim: int
    d_pad: int


def prepare_params(w1, b1, w2, b2, *, mxu_dtype=jnp.float32):
    """Pad the feature dim to a multiple of 128 and cast weights once."""
    dim = w1.shape[0]
    assert w1.shape == (dim, dim) and w2.shape == (dim, dim)
    assert b1.shape == (dim,) and b2.shape == (dim,)
    d_pad = _round_up(dim, 128)
    f32 = jnp.float32

    if dim == d_pad:
        w1_p = w1.astype(mxu_dtype)
        w2_p = w2.astype(mxu_dtype)
        b1_p = b1.astype(f32).reshape(1, d_pad)
        b2_p = b2.astype(f32).reshape(1, d_pad)
    else:
        w1_p = jnp.zeros((d_pad, d_pad), mxu_dtype).at[:dim, :dim].set(w1.astype(mxu_dtype))
        w2_p = jnp.zeros((d_pad, d_pad), mxu_dtype).at[:dim, :dim].set(w2.astype(mxu_dtype))
        b1_p = jnp.zeros((1, d_pad), f32).at[0, :dim].set(b1.astype(f32))
        b2_p = jnp.zeros((1, d_pad), f32).at[0, :dim].set(b2.astype(f32))
    # Padded lanes carry exact zeros end-to-end (LeakyReLU(0)=0), so padded
    # output lanes are zero and the real lanes are unaffected.
    return ResidualBlockParams(w1_p, b1_p, w2_p, b2_p, dim, d_pad)


# --------------------------------------------------------------------------- #
# Kernel: one (TM, D) row tile of  out = x + Lin2(LeakyReLU(Lin1(x))).
# --------------------------------------------------------------------------- #
def residual_block_kernel(x_ref, w1_ref, b1_ref, w2_ref, b2_ref, o_ref):
    x = x_ref[...]                                   # (TM, D) stream dtype
    xf = x.astype(jnp.float32)                       # residual path in f32
    mxu_dtype = w1_ref.dtype                         # f32 or bf16 MXU inputs

    h = jnp.dot(x.astype(mxu_dtype), w1_ref[...],
                preferred_element_type=jnp.float32) + b1_ref[...]
    h = _leaky_relu(h)                               # f32 on the VPU

    y = jnp.dot(h.astype(mxu_dtype), w2_ref[...],
                preferred_element_type=jnp.float32) + b2_ref[...]

    # Residual skip: direct f32 add of the input tile — no identity matmul.
    o_ref[...] = (xf + y).astype(o_ref.dtype)


# --------------------------------------------------------------------------- #
# Wrapper helpers.
# --------------------------------------------------------------------------- #
def _physical_vmem_bytes():
    try:
        return int(pltpu.get_tpu_info().vmem_capacity_bytes)
    except Exception:
        return 64 << 20    # conservative fallback: v7x per-TC VMEM


def _pick_tiling(n, d_pad, stream_itemsize):
    """Row-tile size + padded batch: ~2 MiB x tiles, <row_align waste per tile,
    and >=2 grid steps so v7x megacore has work for both TensorCores."""
    row_align = max(8, 32 // stream_itemsize)              # 8 (f32) / 16 (bf16)
    target_rows = (2 << 20) // max(1, d_pad * stream_itemsize)
    target_rows = max(256, min(4096, target_rows))
    num_tiles = _cdiv(n, target_rows)
    if n > 8:
        num_tiles = max(num_tiles, 2)                      # megacore on v7x
    tm = _round_up(_cdiv(n, num_tiles), row_align)
    n_pad = num_tiles * tm
    return tm, n_pad


def _build_call(n_pad, tm, d_pad, stream_dtype, mxu_dtype, n, dim,
                weight_pipeline_mode):
    weight_buffers = 1 if weight_pipeline_mode is not None else 2
    w_item = jnp.dtype(mxu_dtype).itemsize
    s_item = jnp.dtype(stream_dtype).itemsize

    # VMEM plan: resident weights/biases + double-buffered x/out tiles + live
    # f32 activations, with a little headroom; capped at ~85% of physical VMEM
    # (≈54 MiB on v7x, ≈108 MiB on v5e/v6e).
    vmem_bytes = (weight_buffers * 2 * d_pad * d_pad * w_item
                  + weight_buffers * 2 * d_pad * 4
                  + 2 * 2 * tm * d_pad * s_item
                  + 4 * tm * d_pad * 4
                  + (2 << 20))
    vmem_cap = int(_physical_vmem_bytes() * 0.85)
    vmem_limit = int(min(max(vmem_bytes, 16 << 20), vmem_cap))

    wkw = {} if weight_pipeline_mode is None else {"pipeline_mode": weight_pipeline_mode}

    flops = 2 * n * (2 * dim * dim)                   # two dim x dim matmuls/row
    bytes_accessed = (s_item * 2 * n * dim            # x in + out out
                      + w_item * 2 * dim * dim        # weights (one-time)
                      + 4 * 2 * dim)                  # biases

    return pl.pallas_call(
        residual_block_kernel,
        out_shape=jax.ShapeDtypeStruct((n_pad, d_pad), stream_dtype),
        grid=(n_pad // tm,),
        in_specs=[
            pl.BlockSpec((tm, d_pad), lambda i: (i, 0)),            # x tile (pipelined)
            pl.BlockSpec((d_pad, d_pad), lambda i: (0, 0), **wkw),  # w1 (resident)
            pl.BlockSpec((1, d_pad), lambda i: (0, 0), **wkw),      # b1 (resident)
            pl.BlockSpec((d_pad, d_pad), lambda i: (0, 0), **wkw),  # w2 (resident)
            pl.BlockSpec((1, d_pad), lambda i: (0, 0), **wkw),      # b2 (resident)
        ],
        out_specs=pl.BlockSpec((tm, d_pad), lambda i: (i, 0)),
        compiler_params=pltpu.CompilerParams(
            dimension_semantics=("parallel",),        # shard batch grid on v7x
            vmem_limit_bytes=vmem_limit,
        ),
        cost_estimate=pl.CostEstimate(
            flops=flops, transcendentals=0, bytes_accessed=bytes_accessed),
    )


def residual_block(x, params: ResidualBlockParams, *, stream_dtype=None):
    """x: [N, dim]. params: from prepare_params(). stream_dtype: dtype used to
    stream x / out tiles through HBM (default: x.dtype; bf16 halves traffic)."""
    n, dim = x.shape
    assert dim == params.dim
    d_pad = params.d_pad
    stream_dtype = jnp.dtype(stream_dtype if stream_dtype is not None else x.dtype)

    tm, n_pad = _pick_tiling(n, d_pad, stream_dtype.itemsize)
    aligned = (n == n_pad) and (dim == d_pad)

    if aligned:
        x_p = x.astype(stream_dtype)                  # no-pad fast path
    else:
        x_p = jnp.zeros((n_pad, d_pad), stream_dtype).at[:n, :dim].set(
            x.astype(stream_dtype))

    args = (x_p, params.w1, params.b1, params.w2, params.b2)
    mxu_dtype = params.w1.dtype
    try:
        # Constant-index weight blocks single-buffered (halves resident VMEM).
        out_p = _build_call(n_pad, tm, d_pad, stream_dtype, mxu_dtype,
                            n, dim, pl.Buffered(1))(*args)
    except Exception:
        # Fallback: this jax/Mosaic version rejects pipeline_mode here; use the
        # default pipelining (VMEM estimate already assumes 2 weight buffers).
        out_p = _build_call(n_pad, tm, d_pad, stream_dtype, mxu_dtype,
                            n, dim, None)(*args)

    if aligned:
        return out_p.astype(x.dtype)
    return out_p[:n, :dim].astype(x.dtype)


def residual_block_ref(x, w1, b1, w2, b2):
    """Pure-JAX reference (f32) matching torch: x + Lin2(LeakyReLU(Lin1(x)))."""
    h = _leaky_relu(x @ w1 + b1)
    return x + (h @ w2 + b2)


if __name__ == "__main__":
    batch, dim = 16, 32

    key = jax.random.PRNGKey(0)
    kx, k1, k2, k3, k4 = jax.random.split(key, 5)
    bound = 1.0 / jnp.sqrt(dim)
    x = jax.random.normal(kx, (batch, dim), dtype=jnp.float32)
    w1 = jax.random.uniform(k1, (dim, dim), jnp.float32, -bound, bound)  # [in, out]
    b1 = jax.random.uniform(k2, (dim,), jnp.float32, -bound, bound)
    w2 = jax.random.uniform(k3, (dim, dim), jnp.float32, -bound, bound)  # [in, out]
    b2 = jax.random.uniform(k4, (dim,), jnp.float32, -bound, bound)

    ref = residual_block_ref(x, w1, b1, w2, b2)

    # f32 MXU / f32 streaming path (exact) — params padded/cast once, reused.
    params_f32 = prepare_params(w1, b1, w2, b2)
    out = jax.block_until_ready(residual_block(x, params_f32))
    assert out.shape == (batch, dim)
    assert jnp.allclose(out, ref, atol=1e-5, rtol=1e-5)

    # bf16 MXU inputs + bf16 x/out streaming, f32 accumulate / residual add.
    params_bf16 = prepare_params(w1, b1, w2, b2, mxu_dtype=jnp.bfloat16)
    out_bf16 = jax.block_until_ready(
        residual_block(x, params_bf16, stream_dtype=jnp.bfloat16))
    assert out_bf16.shape == (batch, dim)
    assert jnp.allclose(out_bf16, ref, atol=5e-2, rtol=5e-2)

    print("KERNEL_OK")
</pallas_src>

<mosaic_0001>
module attributes {stable_mosaic.version = 11 : i64} {
  func.func @residual_block_kernel(%arg0: i32, %arg1: memref<8x128xf32, #tpu.memory_space<vmem>>, %arg2: memref<128x128xf32, #tpu.memory_space<vmem>>, %arg3: memref<1x128xf32, #tpu.memory_space<vmem>>, %arg4: memref<128x128xf32, #tpu.memory_space<vmem>>, %arg5: memref<1x128xf32, #tpu.memory_space<vmem>>, %arg6: memref<8x128xf32, #tpu.memory_space<vmem>>) attributes {dimension_semantics = [#tpu.dimension_semantics<parallel>], iteration_bounds = array<i64: 2>, scalar_prefetch = 0 : i64, scratch_operands = 0 : i64, tpu.core_type = #tpu.core_type<tc>, window_params = [{transform_indices = @transform_0, window_bounds = array<i64: 8, 128>}, {pipeline_mode = #tpu.pipeline_mode<synchronous>, transform_indices = @transform_1, window_bounds = array<i64: 128, 128>}, {pipeline_mode = #tpu.pipeline_mode<synchronous>, transform_indices = @transform_2, window_bounds = array<i64: 1, 128>}, {pipeline_mode = #tpu.pipeline_mode<synchronous>, transform_indices = @transform_3, window_bounds = array<i64: 128, 128>}, {pipeline_mode = #tpu.pipeline_mode<synchronous>, transform_indices = @transform_4, window_bounds = array<i64: 1, 128>}, {transform_indices = @transform_5, window_bounds = array<i64: 8, 128>}]} {
    %c0 = arith.constant 0 : index
    %c0_0 = arith.constant 0 : index
    %0 = vector.load %arg1[%c0, %c0_0] : memref<8x128xf32, #tpu.memory_space<vmem>>, vector<8x128xf32>
    %c0_1 = arith.constant 0 : index
    %c0_2 = arith.constant 0 : index
    %1 = vector.load %arg2[%c0_1, %c0_2] : memref<128x128xf32, #tpu.memory_space<vmem>>, vector<128x128xf32>
    %cst = arith.constant dense<0.000000e+00> : vector<8x128xf32>
    %2 = tpu.matmul %0, %1, %cst {dimension_numbers = #tpu.dot_dimension_numbers<[1], [0], [0], [1], [0, 0, 1, 1], [], []>} : vector<8x128xf32>, vector<128x128xf32>, vector<8x128xf32> -> vector<8x128xf32>
    %c0_3 = arith.constant 0 : index
    %c0_4 = arith.constant 0 : index
    %3 = vector.load %arg3[%c0_3, %c0_4] : memref<1x128xf32, #tpu.memory_space<vmem>>, vector<1x128xf32>
    %4 = vector.broadcast %3 : vector<1x128xf32> to vector<8x128xf32>
    %5 = arith.addf %2, %4 : vector<8x128xf32>
    %cst_5 = arith.constant 0.000000e+00 : f32
    %6 = vector.broadcast %cst_5 : f32 to vector<8x128xf32>
    %7 = arith.cmpf ogt, %5, %6 : vector<8x128xf32>
    %cst_6 = arith.constant 0.00999999977 : f32
    %8 = vector.broadcast %cst_6 : f32 to vector<8x128xf32>
    %9 = arith.mulf %8, %5 : vector<8x128xf32>
    %10 = arith.select %7, %5, %9 : vector<8x128xi1>, vector<8x128xf32>
    %c0_7 = arith.constant 0 : index
    %c0_8 = arith.constant 0 : index
    %11 = vector.load %arg4[%c0_7, %c0_8] : memref<128x128xf32, #tpu.memory_space<vmem>>, vector<128x128xf32>
    %cst_9 = arith.constant dense<0.000000e+00> : vector<8x128xf32>
    %12 = tpu.matmul %10, %11, %cst_9 {dimension_numbers = #tpu.dot_dimension_numbers<[1], [0], [0], [1], [0, 0, 1, 1], [], []>} : vector<8x128xf32>, vector<128x128xf32>, vector<8x128xf32> -> vector<8x128xf32>
    %c0_10 = arith.constant 0 : index
    %c0_11 = arith.constant 0 : index
    %13 = vector.load %arg5[%c0_10, %c0_11] : memref<1x128xf32, #tpu.memory_space<vmem>>, vector<1x128xf32>
    %14 = vector.broadcast %13 : vector<1x128xf32> to vector<8x128xf32>
    %15 = arith.addf %12, %14 : vector<8x128xf32>
    %16 = arith.addf %0, %15 : vector<8x128xf32>
    %c0_12 = arith.constant 0 : index
    %c0_13 = arith.constant 0 : index
    %17 = vector.load %arg6[%c0_12, %c0_13] : memref<8x128xf32, #tpu.memory_space<vmem>>, vector<8x128xf32>
    tpu.vector_store %arg6[%c0_12, %c0_13], %16 {strides = array<i32>} : memref<8x128xf32, #tpu.memory_space<vmem>>, vector<8x128xf32>,
    return
  }
  func.func @transform_0(%arg0: i32) -> (i32, i32) {
    %c0_i32 = arith.constant 0 : i32
    %c0_i32_0 = arith.constant 0 : i32
    return %arg0, %c0_i32 : i32, i32
  }
  func.func @transform_1(%arg0: i32) -> (i32, i32) {
    %c0_i32 = arith.constant 0 : i32
    %c0_i32_0 = arith.constant 0 : i32
    %c0_i32_1 = arith.constant 0 : i32
    return %c0_i32, %c0_i32_0 : i32, i32
  }
  func.func @transform_2(%arg0: i32) -> (i32, i32) {
    %c0_i32 = arith.constant 0 : i32
    %c0_i32_0 = arith.constant 0 : i32
    %c0_i32_1 = arith.constant 0 : i32
    return %c0_i32, %c0_i32_0 : i32, i32
  }
  func.func @transform_3(%arg0: i32) -> (i32, i32) {
    %c0_i32 = arith.constant 0 : i32
    %c0_i32_0 = arith.constant 0 : i32
    %c0_i32_1 = arith.constant 0 : i32
    return %c0_i32, %c0_i32_0 : i32, i32
  }
  func.func @transform_4(%arg0: i32) -> (i32, i32) {
    %c0_i32 = arith.constant 0 : i32
    %c0_i32_0 = arith.constant 0 : i32
    %c0_i32_1 = arith.constant 0 : i32
    return %c0_i32, %c0_i32_0 : i32, i32
  }
  func.func @transform_5(%arg0: i32) -> (i32, i32) {
    %c0_i32 = arith.constant 0 : i32
    %c0_i32_0 = arith.constant 0 : i32
    return %arg0, %c0_i32 : i32, i32
  }
}

module attributes {stable_mosaic.version = 11 : i64} {
  func.func @residual_block_kernel(%arg0: i32, %arg1: memref<8x128xf32, #tpu.memory_space<vmem>>, %arg2: memref<128x128xf32, #tpu.memory_space<vmem>>, %arg3: memref<1x128xf32, #tpu.memory_space<vmem>>, %arg4: memref<128x128xf32, #tpu.memory_space<vmem>>, %arg5: memref<1x128xf32, #tpu.memory_space<vmem>>, %arg6: memref<8x128xf32, #tpu.memory_space<vmem>>) attributes {dimension_semantics = [#tpu.dimension_semantics<parallel>], iteration_bounds = array<i64: 2>, scalar_prefetch = 0 : i64, scratch_operands = 0 : i64, tpu.core_type = #tpu.core_type<tc>, window_params = [{transform_indices = @transform_0, window_bounds = array<i64: 8, 128>}, {pipeline_mode = #tpu.pipeline_mode<synchronous>, transform_indices = @transform_1, window_bounds = array<i64: 128, 128>}, {pipeline_mode = #tpu.pipeline_mode<synchronous>, transform_indices = @transform_2, window_bounds = array<i64: 1, 128>}, {pipeline_mode = #tpu.pipeline_mode<synchronous>, transform_indices = @transform_3, window_bounds = array<i64: 128, 128>}, {pipeline_mode = #tpu.pipeline_mode<synchronous>, transform_indices = @transform_4, window_bounds = array<i64: 1, 128>}, {transform_indices = @transform_5, window_bounds = array<i64: 8, 128>}]} {
    %c0 = arith.constant 0 : index
    %c0_0 = arith.constant 0 : index
    %0 = vector.load %arg1[%c0, %c0_0] : memref<8x128xf32, #tpu.memory_space<vmem>>, vector<8x128xf32>
    %c0_1 = arith.constant 0 : index
    %c0_2 = arith.constant 0 : index
    %1 = vector.load %arg2[%c0_1, %c0_2] : memref<128x128xf32, #tpu.memory_space<vmem>>, vector<128x128xf32>
    %cst = arith.constant dense<0.000000e+00> : vector<8x128xf32>
    %2 = tpu.matmul %0, %1, %cst {dimension_numbers = #tpu.dot_dimension_numbers<[1], [0], [0], [1], [0, 0, 1, 1], [], []>} : vector<8x128xf32>, vector<128x128xf32>, vector<8x128xf32> -> vector<8x128xf32>
    %c0_3 = arith.constant 0 : index
    %c0_4 = arith.constant 0 : index
    %3 = vector.load %arg3[%c0_3, %c0_4] : memref<1x128xf32, #tpu.memory_space<vmem>>, vector<1x128xf32>
    %4 = vector.broadcast %3 : vector<1x128xf32> to vector<8x128xf32>
    %5 = arith.addf %2, %4 : vector<8x128xf32>
    %cst_5 = arith.constant 0.000000e+00 : f32
    %6 = vector.broadcast %cst_5 : f32 to vector<8x128xf32>
    %7 = arith.cmpf ogt, %5, %6 : vector<8x128xf32>
    %cst_6 = arith.constant 0.00999999977 : f32
    %8 = vector.broadcast %cst_6 : f32 to vector<8x128xf32>
    %9 = arith.mulf %8, %5 : vector<8x128xf32>
    %10 = arith.select %7, %5, %9 : vector<8x128xi1>, vector<8x128xf32>
    %c0_7 = arith.constant 0 : index
    %c0_8 = arith.constant 0 : index
    %11 = vector.load %arg4[%c0_7, %c0_8] : memref<128x128xf32, #tpu.memory_space<vmem>>, vector<128x128xf32>
    %cst_9 = arith.constant dense<0.000000e+00> : vector<8x128xf32>
    %12 = tpu.matmul %10, %11, %cst_9 {dimension_numbers = #tpu.dot_dimension_numbers<[1], [0], [0], [1], [0, 0, 1, 1], [], []>} : vector<8x128xf32>, vector<128x128xf32>, vector<8x128xf32> -> vector<8x128xf32>
    %c0_10 = arith.constant 0 : index
    %c0_11 = arith.constant 0 : index
    %13 = vector.load %arg5[%c0_10, %c0_11] : memref<1x128xf32, #tpu.memory_space<vmem>>, vector<1x128xf32>
    %14 = vector.broadcast %13 : vector<1x128xf32> to vector<8x128xf32>
    %15 = arith.addf %12, %14 : vector<8x128xf32>
    %16 = arith.addf %0, %15 : vector<8x128xf32>
    %c0_12 = arith.constant 0 : index
    %c0_13 = arith.constant 0 : index
    %17 = vector.load %arg6[%c0_12, %c0_13] : memref<8x128xf32, #tpu.memory_space<vmem>>, vector<8x128xf32>
    tpu.vector_store %arg6[%c0_12, %c0_13], %16 {strides = array<i32>} : memref<8x128xf32, #tpu.memory_space<vmem>>, vector<8x128xf32>,
    return
  }
  func.func @transform_0(%arg0: i32) -> (i32, i32) {
    %c0_i32 = arith.constant 0 : i32
    %c0_i32_0 = arith.constant 0 : i32
    return %arg0, %c0_i32 : i32, i32
  }
  func.func @transform_1(%arg0: i32) -> (i32, i32) {
    %c0_i32 = arith.constant 0 : i32
    %c0_i32_0 = arith.constant 0 : i32
    %c0_i32_1 = arith.constant 0 : i32
    return %c0_i32, %c0_i32_0 : i32, i32
  }
  func.func @transform_2(%arg0: i32) -> (i32, i32) {
    %c0_i32 = arith.constant 0 : i32
    %c0_i32_0 = arith.constant 0 : i32
    %c0_i32_1 = arith.constant 0 : i32
    return %c0_i32, %c0_i32_0 : i32, i32
  }
  func.func @transform_3(%arg0: i32) -> (i32, i32) {
    %c0_i32 = arith.constant 0 : i32
    %c0_i32_0 = arith.constant 0 : i32
    %c0_i32_1 = arith.constant 0 : i32
    return %c0_i32, %c0_i32_0 : i32, i32
  }
  func.func @transform_4(%arg0: i32) -> (i32, i32) {
    %c0_i32 = arith.constant 0 : i32
    %c0_i32_0 = arith.constant 0 : i32
    %c0_i32_1 = arith.constant 0 : i32
    return %c0_i32, %c0_i32_0 : i32, i32
  }
  func.func @transform_5(%arg0: i32) -> (i32, i32) {
    %c0_i32 = arith.constant 0 : i32
    %c0_i32_0 = arith.constant 0 : i32
    return %arg0, %c0_i32 : i32, i32
  }
}

</mosaic_0001>

<bundles_post_ra>
// kernel: tpu_custom_call.1
= control target key start
LH: loop header
LB: loop body
LE: loop exit
PB: predicated region body
PF: predicated region fallthrough
CT: control target
= control target key end

     0   :  { %10 = vsyncpa [#allocation3], 0  ;;  %s1261_s0 = inlined_call_operand.hbm [shape: f32[16,128], index: 0, kind: input, shape index: {}]   ;;  %s1262_s1 = inlined_call_operand.hbm [shape: f32[128,128], index: 1, kind: input, shape index: {}]   ;;  %s1263_s2 = inlined_call_operand.vmem [shape: f32[1,128], index: 2, kind: input, shape index: {}]   ;;  %s1264_s3 = inlined_call_operand.hbm [shape: f32[128,128], index: 3, kind: input, shape index: {}]   ;;  %s1265_s4 = inlined_call_operand.vmem [shape: f32[1,128], index: 4, kind: input, shape index: {}]   ;;  %s1266_s5 = inlined_call_operand.hbm [shape: f32[16,128], index: 5, kind: output, shape index: {}]  }
   0x1   :  { %12 = vsyncpa [#allocation3 + $0x1], 0 }
   0x2   :  { %13 = vsyncpa [#allocation6], 0 }
   0x3   :  { %14 = vsyncpa [#allocation4], 0 }
   0x4   :  { %16 = vsyncpa [#allocation4 + $0x1], 0  ;;  %s1003_s18 = smov 0   ;;  %s1005_s19 = smov 0  }
   0x5   :  { %s1007_s20 = smov 0   ;;  %s1009_s21 = smov 0  }
   0x6 LB: > { %s1024_s22 = sadd.s32 4294967295, %s962_s21   ;;  %s564_s23 = sadd.s32 4294967294, %s962_s21   ;;  %s962_s21 = sphi %s1009_s21, %s1286_s21   ;;  %s958_s20 = sphi %s1007_s20, %s1285_s20   ;;  %s954_s19 = sphi %s1005_s19, %s1284_s19   ;;  %s950_s18 = sphi %s1003_s18, %s1283_s18  }
   0x7   : > { %p42_p0 = scmp.ne.s32.totalorder %s954_s19, %s950_s18  ;;  %p1267_p1 = scmp.eq.s32.totalorder %s1024_s22, 0 }
   0x8   : > { %p156_p3 = scmp.eq.s32.totalorder %s564_s23, 1  ;;  %p565_p5 = scmp.ge.s32.totalorder %s962_s21, 1 }
   0x9   : > { %p1033_p4 = por %p1267_p1, %p42_p0  ;;  %p163_p7 = scmp.lt.s32.totalorder %s962_s21, 3 }
   0xa   : > { %p1038_p6 = por %p156_p3, %p42_p0  ;;  %s964_s27 = smov [#allocation5]  }
   0xb   : > { %s1270_s24 = scalar_select %p1033_p4, 1, 0 }
   0xc   : > { %s1271_s25 = scalar_select %p1038_p6, 1, 0 }
   0xd   : > { %p1043_p8 = pnand %p565_p5, %p163_p7  ;;  %s175_s28 = sshll.u32 %s964_s27, 4  ;;  %s1047_s28 = int_to_ptr.vmem [resolvable:$true] %s175_s28 }
   0xe   : > { %s965_s30 = smov [#allocation7]   ;;  %s806_s9 = scalar_lea.hbm %s1262_s1, 2048 }
   0xf   : > { %p746_p9 = pneg %p1043_p8  ;;  %s191_s6 = sshll.u32 %s965_s30, 4  ;;  %s1058_s6 = int_to_ptr.vmem [resolvable:$true] %s191_s6 }
  0x10   : > { %p807_p12 = scmp.ne.s32.totalorder %s1262_s1, %s806_s9  ;;  %p813_p5 = scmp.lt.u32.totalorder %s806_s9, %s1262_s1 }
  0x11   : > { %p1054_p11 = pnand %p746_p9, %p1267_p1 }
  0x13   : > { %p808_p13 = pneg %p1054_p11 }
  0x15   : > { %p809_p0 = pnand %p808_p13, %p807_p12 }
  0x17   : > { %p810_p3 = pneg %p809_p0 }
  0x19   : > { %p815_p7 = pnand %p813_p5, %p810_p3 }
  0x1b   : > { %818 = shalt.err (!%p815_p7)
}
  0x1c   : > { %s819_s14 = scalar_lea.vmem %s1047_s28, 2048  ;;  %p827_p2 = scmp.lt.s32.totalorder %s1047_s28, %s1047_s28 }
  0x1d   : > { %p820_p9 = scmp.ne.s32.totalorder %s1047_s28, %s819_s14  ;;  %p828_p12 = scmp.lt.s32.totalorder %s819_s14, %s819_s14 }
  0x1f   : > { %p822_p10 = pnand %p820_p9, %p808_p13  ;;  %p829_p0 = por %p828_p12, %p827_p2 }
  0x21   : > { %p823_p1 = pneg %p822_p10 }
  0x23   : > { %p830_p6 = pnand %p829_p0, %p823_p1 }
  0x25   : > { %833 = shalt.err (!%p830_p6)
}
  0x26   : > { %s966_s15 = smov 128   ;;  %s967_s16 = smov 8  }
  0x27   : > { %749 = dma.hbm_to_vmem [thread:$0]  (!%p1054_p11), %s1262_s1, 2048, %s1047_s28, [#allocation6], %s966_s15, %s966_s15, %s967_s16  }
  0x28   : > { %s834_s7 = scalar_lea.hbm %s1264_s3, 2048 }
  0x29   : > { %p835_p2 = scmp.ne.s32.totalorder %s1264_s3, %s834_s7  ;;  %p841_p10 = scmp.lt.u32.totalorder %s834_s7, %s1264_s3 }
  0x2b   : > { %p837_p1 = pnand %p835_p2, %p808_p13 }
  0x2d   : > { %p838_p6 = pneg %p837_p1 }
  0x2f   : > { %p843_p3 = pnand %p841_p10, %p838_p6 }
  0x31   : > { %846 = shalt.err (!%p843_p3)
}
  0x32   : > { %s847_s28 = scalar_lea.vmem %s1058_s6, 2048  ;;  %p855_p12 = scmp.lt.s32.totalorder %s1058_s6, %s1058_s6 }
  0x33   : > { %p848_p5 = scmp.ne.s32.totalorder %s1058_s6, %s847_s28  ;;  %p856_p0 = scmp.lt.s32.totalorder %s847_s28, %s847_s28 }
  0x35   : > { %p850_p7 = pnand %p848_p5, %p808_p13  ;;  %p857_p2 = por %p856_p0, %p855_p12 }
  0x37   : > { %p851_p9 = pneg %p850_p7 }
  0x39   : > { %p858_p1 = pnand %p857_p2, %p851_p9 }
  0x3b   : > { %861 = shalt.err (!%p858_p1)
}
  0x3c   : > { %752 = dma.hbm_to_vmem [thread:$0]  (!%p1054_p11), %s1264_s3, 2048, %s1058_s6, [#allocation6], %s966_s15, %s966_s15, %s967_s16  }
  0x3d   : > { %s1113_s14 = sadd.s32 1, %s962_s21   ;;  %s29_s29 = sadd.s32 1, %s958_s20 }
  0x3e   : > { %s26_s17 = ssub.s32 %s962_s21, %s1113_s14  ;;  %p36_p13 = scmp.ne.s32.totalorder %s958_s20, %s954_s19 }
  0x3f   : > { %p27_p6 = scmp.eq.s32.totalorder %s26_s17, 0  ;;  %p37_p10 = scmp.eq.s32.totalorder %s962_s21, 0 }
  0x40   : > { %p1274_p3 = scmp.eq.s32.totalorder %s1024_s22, 1  ;;  %p763_p7 = scmp.lt.s32.totalorder %s962_s21, 2 }
  0x41   : > { %s1129_s27 = scalar_select %p27_p6, %s958_s20, %s29_s29  }
  0x42   : > { %p1123_p5 = por %p1274_p3, %p36_p13  ;;  %p38_p9 = por %p37_p10, %p36_p13 }
  0x43   : > { %s208_s30 = sand.u32 1, %s958_s20   ;;  %s570_s6 = sshll.u32 %s962_s21, 7 }
  0x44   : > { %s1275_s23 = scalar_select %p1123_p5, 1, 0 }
  0x45   : > { %s569_s7 = sshll.u32 %s208_s30, 3  ;;  %s1136_s8 = scalar_lea.hbm %s1261_s0, %s570_s6 }
  0x46   : > { %s212_s9 = scalar_lea.vmem [#allocation2], %s569_s7  ;;  %p1140_p11 = pnand %p763_p7, %p38_p9 }
  0x47   : > { %s219_s10 = sshll.u32 %s212_s9, 4  ;;  %s209_s28 = scalar_lea.sflag [#allocation3], %s208_s30  ;;  %s1138_s10 = int_to_ptr.vmem [resolvable:$true] %s219_s10 }
  0x48   : > { %s862_s12 = scalar_lea.hbm %s1136_s8, 128  ;;  %p864_p0 = pneg %p1140_p11 }
  0x49   : > { %p863_p12 = scmp.ne.s32.totalorder %s1136_s8, %s862_s12  ;;  %s867_s17 = scalar_lea.hbm %s1261_s0, 256 }
  0x4a   : > { %p868_p13 = scmp.lt.u32.totalorder %s1136_s8, %s1261_s0  ;;  %p869_p6 = scmp.lt.u32.totalorder %s867_s17, %s862_s12 }
  0x4b   : > { %p865_p2 = pnand %p864_p0, %p863_p12  ;;  %p871_p3 = scmp.lt.u32.totalorder %s862_s12, %s1136_s8 }
  0x4c   : > { %p870_p10 = por %p869_p6, %p868_p13 }
  0x4d   : > { %p866_p1 = pneg %p865_p2 }
  0x4e   : > { %p872_p7 = por %p871_p3, %p870_p10 }
  0x50   : > { %p873_p9 = pnand %p872_p7, %p866_p1 }
  0x52   : > { %876 = shalt.err (!%p873_p9)
}
  0x53   : > { %s877_s30 = scalar_lea.vmem %s1138_s10, 128  ;;  %s968_s15 = smov [#allocation2]  }
  0x54   : > { %p878_p12 = scmp.ne.s32.totalorder %s1138_s10, %s877_s30  ;;  %s882_s16 = sshll.u32 %s968_s15, 4  ;;  %s883_s16 = int_to_ptr.vmem [resolvable:$false] %s882_s16 }
  0x55   : > { %s884_s9 = scalar_lea.vmem %s883_s16, 256  ;;  %p885_p4 = scmp.lt.s32.totalorder %s1138_s10, %s883_s16 }
  0x56   : > { %p880_p2 = pnand %p878_p12, %p864_p0  ;;  %p886_p13 = scmp.lt.s32.totalorder %s884_s9, %s877_s30 }
  0x58   : > { %p881_p5 = pneg %p880_p2  ;;  %p887_p6 = por %p886_p13, %p885_p4 }
  0x5a   : > { %p888_p10 = pnand %p887_p6, %p881_p5 }
  0x5c   : > { %891 = shalt.err (!%p888_p10)
}
  0x5d   : > { %756 = dma.hbm_to_vmem [thread:$0]  (!%p1140_p11), %s1136_s8, 128, %s1138_s10, %s209_s28  }
  0x5e   : > { %228 = sbr.rel (%p1043_p8) target bundleno = 586 (0x24a), region = 40  ;;  %s1172_s12 = sand.u32 (!%p1043_p8), 1, %s954_s19  }
  0x5f   : > { %s572_s13 = sshll.u32 (!%p1043_p8), %s1172_s12, 3  ;;  %s231_s29 = scalar_lea.sflag (!%p1043_p8), [#allocation3], %s1172_s12 }
  0x60   : > { %s1178_s17 = scalar_lea.vmem (!%p1043_p8), [#allocation2], %s572_s13  ;;  %p1277_p4 = scmp.ne.s32.totalorder (!%p1043_p8), %s1270_s24, 0 }
  0x65   : > { %937 = dma.done.wait (%p1277_p4), %s231_s29, 128  }
  0x66   : > { %939 = vsyncadd (%p1277_p4), %s231_s29, 4294967168  ;;  %p1278_p5 = scmp.eq.s32.totalorder %s1024_s22, 0 }
  0x68   : > { %941 = dma.done.wait (%p1278_p5), [#allocation6], 4096   ;;  %p1279_p8 = pmov %p1278_p5 }
  0x69   : > { %v969_v0 = vmov 0.0|0.0   ;;  %vm970_vm0 = vmmov 0   ;;  %v971_v1 = vmov 0.0   ;;  %v270_v2 = vld [vmem:[#allocation5] sm:$0xff]  ;;  %v271_v3 = vld [vmem:[#allocation5 + $0x8] sm:$0xff]  ;;  %v272_v4 = vld [vmem:[#allocation5 + $0x10] sm:$0xff] }
  0x6a   : > { %943 = vsyncadd (%p1279_p8), [#allocation6], 4294963200  ;;  %686 = vmatprep.subr.bf16.mxu0 %v969_v0  ;;  %648 = vmatprep.mubr.msk.f32.mxu0 %vm970_vm0, %v971_v1  ;;  %v687_v5 = vpack.c.bf16 %v271_v3, %v270_v2  ;;  %v273_v6 = vld [vmem:[#allocation5 + $0x18] sm:$0xff]  ;;  %v274_v8 = vld [vmem:[#allocation5 + $0x20] sm:$0xff]  ;;  %s579_s11 = sshll.u32 %s1024_s22, 7  ;;  %s268_s28 = scalar_lea.vmem [#allocation8], %s572_s13 }
  0x6b   : > { %710 = vmatprep.subr.bf16.mxu1 %v969_v0  ;;  %683 = vmatprep.mubr.msk.f32.mxu1 %vm970_vm0, %v971_v1  ;;  %v690_v7 = vpack.c.bf16 %v273_v6, %v272_v4  ;;  %v275_v9 = vld [vmem:[#allocation5 + $0x28] sm:$0xff]  ;;  %v366_v10 = vld [vmem:[#allocation7] sm:$0xff]  ;;  %v368_v12 = vld [vmem:[#allocation7 + $0x10] sm:$0xff]  ;;  %s475_s7 = sshll.u32 %s268_s28, 4  ;;  %s1217_s15 = scalar_lea.hbm %s1266_s5, %s579_s11  ;;  %s1219_s7 = int_to_ptr.vmem [resolvable:$true] %s475_s7 }
  0x6c   : > { %688 = vmatpush3.bf16.msra.mxu0 %v687_v5  ;;  %v367_v11 = vld [vmem:[#allocation7 + $0x8] sm:$0xff]  ;;  %v369_v13 = vld [vmem:[#allocation7 + $0x18] sm:$0xff]  ;;  %v693_v14 = vpack.c.bf16 %v275_v9, %v274_v8  ;;  %v276_v16 = vld [vmem:[#allocation5 + $0x30] sm:$0xff]  ;;  %s462_s16 = scalar_lea.sflag [#allocation4], %s1172_s12  ;;  %s892_s9 = scalar_lea.vmem %s1219_s7, 128 }
  0x6d   : > { %689 = vmatprep.subr.bf16.mxu0 %v969_v0  ;;  %v711_v15 = vpack.c.bf16 %v367_v11, %v366_v10  ;;  %v277_v17 = vld [vmem:[#allocation5 + $0x38] sm:$0xff]  ;;  %v714_v18 = vpack.c.bf16 %v369_v13, %v368_v12  ;;  %v370_v19 = vld [vmem:[#allocation7 + $0x20] sm:$0xff]  ;;  %v371_v20 = vld [vmem:[#allocation7 + $0x28] sm:$0xff]  ;;  %p893_p11 = scmp.ne.s32.totalorder %s1219_s7, %s892_s9  ;;  %p1280_p0 = scmp.ne.s32.totalorder %s1275_s23, 0 }
  0x6e   : > { %v696_v21 = vpack.c.bf16 %v277_v17, %v276_v16  ;;  %v278_v22 = vld [vmem:[#allocation5 + $0x40] sm:$0xff]  ;;  %v279_v23 = vld [vmem:[#allocation5 + $0x48] sm:$0xff]  ;;  %v717_v24 = vpack.c.bf16 %v371_v20, %v370_v19  ;;  %v372_v25 = vld [vmem:[#allocation7 + $0x30] sm:$0xff]  ;;  %s972_s22 = smov [#allocation8]  }
  0x6f   : > { %712 = vmatpush3.bf16.msra.mxu1 %v711_v15  ;;  %v373_v26 = vld [vmem:[#allocation7 + $0x38] sm:$0xff]  ;;  %v699_v27 = vpack.c.bf16 %v279_v23, %v278_v22  ;;  %v280_v28 = vld [vmem:[#allocation5 + $0x50] sm:$0xff]  ;;  %v374_v31 = vld [vmem:[#allocation7 + $0x40] sm:$0xff]  ;;  %p894_p1 = pnand %p893_p11, %p1280_p0  ;;  %s896_s13 = sshll.u32 %s972_s22, 4  ;;  %s897_s13 = int_to_ptr.vmem [resolvable:$false] %s896_s13 }
  0x70   : > { %691 = vmatpush3.bf16.msra.mxu0 %v690_v7  ;;  %713 = vmatprep.subr.bf16.mxu1 %v969_v0  ;;  %v281_v29 = vld [vmem:[#allocation5 + $0x58] sm:$0xff]  ;;  %v720_v30 = vpack.c.bf16 %v373_v26, %v372_v25  ;;  %v375_v32 = vld [vmem:[#allocation7 + $0x48] sm:$0xff]  ;;  %v282_v34 = vld [vmem:[#allocation5 + $0x60] sm:$0xff]  ;;  %s898_s29 = scalar_lea.vmem %s897_s13, 256  ;;  %p899_p7 = scmp.lt.s32.totalorder %s1219_s7, %s897_s13 }
  0x71   : > { %692 = vmatprep.subr.bf16.mxu0 %v969_v0  ;;  %v702_v33 = vpack.c.bf16 %v281_v29, %v280_v28  ;;  %v283_v35 = vld [vmem:[#allocation5 + $0x68] sm:$0xff]  ;;  %v723_v36 = vpack.c.bf16 %v375_v32, %v374_v31  ;;  %v376_v37 = vld [vmem:[#allocation7 + $0x50] sm:$0xff]  ;;  %v377_v38 = vld [vmem:[#allocation7 + $0x58] sm:$0xff]  ;;  %p895_p3 = pneg %p894_p1  ;;  %p900_p9 = scmp.lt.s32.totalorder %s898_s29, %s892_s9 }
  0x72   : > { %v705_v39 = vpack.c.bf16 %v283_v35, %v282_v34  ;;  %v284_v40 = vld [vmem:[#allocation5 + $0x70] sm:$0xff]  ;;  %v285_v41 = vld [vmem:[#allocation5 + $0x78] sm:$0xff]  ;;  %v726_v42 = vpack.c.bf16 %v377_v38, %v376_v37  ;;  %v378_v43 = vld [vmem:[#allocation7 + $0x60] sm:$0xff] }
  0x73   : > { %715 = vmatpush3.bf16.msra.mxu1 %v714_v18  ;;  %v379_v44 = vld [vmem:[#allocation7 + $0x68] sm:$0xff]  ;;  %v708_v45 = vpack.c.bf16 %v285_v41, %v284_v40  ;;  %v269_v47 = vld [vmem:[%s1178_s17] sm:$0xff]  ;;  %p901_p12 = por %p900_p9, %p899_p7 }
  0x74   : > { %694 = vmatpush3.bf16.msra.mxu0 %v693_v14  ;;  %716 = vmatprep.subr.bf16.mxu1 %v969_v0  ;;  %v729_v46 = vpack.c.bf16 %v379_v44, %v378_v43  ;;  %v380_v48 = vld [vmem:[#allocation7 + $0x70] sm:$0xff]  ;;  %v381_v49 = vld [vmem:[#allocation7 + $0x78] sm:$0xff] }
  0x75   : > { %695 = vmatprep.subr.bf16.mxu0 %v969_v0  ;;  %v732_v50 = vpack.c.bf16 %v381_v49, %v380_v48  ;;  %v576_v51 = vld [vmem:[%s1263_s2] ss:$0 sm:$0xff]  ;;  %p902_p2 = pnand %p901_p12, %p895_p3 }
  0x76   : > { %v577_v57 = vld [vmem:[%s1265_s4] ss:$0 sm:$0xff] }
  0x77   : > { %718 = vmatpush3.bf16.msra.mxu1 %v717_v24 }
  0x78   : > { %697 = vmatpush3.bf16.msra.mxu0 %v696_v21  ;;  %719 = vmatprep.subr.bf16.mxu1 %v969_v0 }
  0x79   : > { %698 = vmatprep.subr.bf16.mxu0 %v969_v0 }
  0x7b   : > { %721 = vmatpush3.bf16.msra.mxu1 %v720_v30 }
  0x7c   : > { %700 = vmatpush3.bf16.msra.mxu0 %v699_v27  ;;  %722 = vmatprep.subr.bf16.mxu1 %v969_v0 }
  0x7d   : > { %701 = vmatprep.subr.bf16.mxu0 %v969_v0 }
  0x7f   : > { %724 = vmatpush3.bf16.msra.mxu1 %v723_v36 }
  0x80   : > { %703 = vmatpush3.bf16.msra.mxu0 %v702_v33  ;;  %725 = vmatprep.subr.bf16.mxu1 %v969_v0 }
  0x81   : > { %704 = vmatprep.subr.bf16.mxu0 %v969_v0 }
  0x83   : > { %727 = vmatpush3.bf16.msra.mxu1 %v726_v42 }
  0x84   : > { %706 = vmatpush3.bf16.msra.mxu0 %v705_v39  ;;  %728 = vmatprep.subr.bf16.mxu1 %v969_v0 }
  0x85   : > { %707 = vmatprep.subr.bf16.mxu0 %v969_v0 }
  0x87   : > { %730 = vmatpush3.bf16.msra.mxu1 %v729_v46 }
  0x88   : > { %709 = vmatpush3.bf16.msra.mxu0 %v708_v45  ;;  %731 = vmatprep.subr.bf16.mxu1 %v969_v0 }
  0x8b   : > { %649 = vmatmul.mubr.f32.vlgmr.msra.gmra.mrb[0].mxu0 %v269_v47  ;;  %733 = vmatpush3.bf16.msra.mxu1 %v732_v50 }
 0x15e   : > { %v359_v52 = vpop.f32.mrb[0].mxu0 }
 0x15f   : > { %v360_v53 = vadd.f32 %v576_v51, %v359_v52  ;;  %v650_v54 = vpop.f32.mrb[1].mxu0 }
 0x161   : > { %v364_v55 = vmul.f32 0.01, %v360_v53  ;;  %vm363_vm1 = vcmp.gt.f32.partialorder %v360_v53, 0.0 }
 0x163   : > { %v365_v56 = vsel %vm363_vm1, %v360_v53, %v364_v55 }
 0x164   : > { %684 = vmatmul.mubr.f32.vlgmr.msra.gmra.mrb[0].mxu1 %v365_v56 }
 0x237   : > { %v455_v58 = vpop.f32.mrb[0].mxu1 }
 0x238   : > { %v456_v59 = vadd.f32 %v577_v57, %v455_v58  ;;  %v685_v60 = vpop.f32.mrb[1].mxu1 }
 0x23a   : > { %v459_v61 = vadd.f32 %v456_v59, %v269_v47 }
 0x23c   : > { %460 = vst [vmem:[%s268_s28] sm:$0xff] %v459_v61 }
 0x23d   : > { %905 = shalt.err (!%p902_p2)
}
 0x23e   : > { %s906_s12 = scalar_lea.hbm %s1217_s15, 128  ;;  %s910_s26 = scalar_lea.hbm %s1266_s5, 256 }
 0x23f   : > { %p907_p13 = scmp.ne.s32.totalorder %s1217_s15, %s906_s12  ;;  %p911_p4 = scmp.lt.u32.totalorder %s1217_s15, %s1266_s5 }
 0x240   : > { %p912_p5 = scmp.lt.u32.totalorder %s910_s26, %s906_s12  ;;  %p914_p11 = scmp.lt.u32.totalorder %s906_s12, %s1217_s15 }
 0x241   : > { %p908_p6 = pnand %p907_p13, %p1280_p0 }
 0x242   : > { %p913_p8 = por %p912_p5, %p911_p4 }
 0x243   : > { %p909_p10 = pneg %p908_p6 }
 0x244   : > { %p915_p1 = por %p914_p11, %p913_p8 }
 0x246   : > { %p916_p3 = pnand %p915_p1, %p909_p10 }
 0x248   : > { %919 = shalt.err (!%p916_p3)
}
 0x249   : > { %744 = dma.vmem_to_hbm [thread:$0]  (%p1280_p0), %s1219_s7, 128, %s1217_s15, %s462_s16  }
 0x24a PF: > { %s487_s11 = sand.u32 1, %s950_s18   ;;  %p1281_p7 = scmp.ne.s32.totalorder %s1271_s25, 0 }
 0x24b   : > { %p1282_p9 = scmp.ge.s32.totalorder %s962_s21, 2  ;;  %s488_s28 = scalar_lea.sflag [#allocation4], %s487_s11 }
 0x24d   : > { %p758_p12 = pnand %p1282_p9, %p1281_p7 }
 0x24f   : > { %945 = dma.done.wait (!%p758_p12), %s488_s28, 128  }
 0x250   : > { %947 = vsyncadd (!%p758_p12), %s488_s28, 4294967168  ;;  %p19_p2 = scmp.ge.s32.totalorder %s1113_s14, 4   ;;  %s1283_s18 = smov %s954_s19 }
 0x251   : > { %s1284_s19 = smov %s958_s20  ;;  %s1285_s20 = smov %s1129_s27 }
 0x252   : > { %s1286_s21 = smov %s1113_s14  ;;  %21 = sbr.rel (!%p19_p2) target bundleno = 6 (0x6), region = 93 }
 0x259   :  { %493 = vsyncpa [#allocation3], 1 }
 0x25a   :  { %495 = vsyncpa [#allocation3 + $0x1], 1 }
 0x25b   :  { %496 = vsyncpa [#allocation6], 1 }
 0x25c   :  { %497 = vsyncpa [#allocation4], 1 }
 0x25d   :  { %499 = vsyncpa [#allocation4 + $0x1], 1 }

// kernel: tpu_custom_call.1
= control target key start
LH: loop header
LB: loop body
LE: loop exit
PB: predicated region body
PF: predicated region fallthrough
CT: control target
= control target key end

     0   :  { %10 = vsyncpa [#allocation3], 0  ;;  %s1261_s0 = inlined_call_operand.hbm [shape: f32[16,128], index: 0, kind: input, shape index: {}]   ;;  %s1262_s1 = inlined_call_operand.hbm [shape: f32[128,128], index: 1, kind: input, shape index: {}]   ;;  %s1263_s2 = inlined_call_operand.vmem [shape: f32[1,128], index: 2, kind: input, shape index: {}]   ;;  %s1264_s3 = inlined_call_operand.hbm [shape: f32[128,128], index: 3, kind: input, shape index: {}]   ;;  %s1265_s4 = inlined_call_operand.vmem [shape: f32[1,128], index: 4, kind: input, shape index: {}]   ;;  %s1266_s5 = inlined_call_operand.hbm [shape: f32[16,128], index: 5, kind: output, shape index: {}]  }
   0x1   :  { %12 = vsyncpa [#allocation3 + $0x1], 0 }
   0x2   :  { %13 = vsyncpa [#allocation6], 0 }
   0x3   :  { %14 = vsyncpa [#allocation4], 0 }
   0x4   :  { %16 = vsyncpa [#allocation4 + $0x1], 0  ;;  %s1003_s18 = smov 0   ;;  %s1005_s19 = smov 0  }
   0x5   :  { %s1007_s20 = smov 0   ;;  %s1009_s21 = smov 0  }
   0x6 LB: > { %s1024_s22 = sadd.s32 4294967295, %s962_s21   ;;  %s564_s23 = sadd.s32 4294967294, %s962_s21   ;;  %s962_s21 = sphi %s1009_s21, %s1286_s21   ;;  %s958_s20 = sphi %s1007_s20, %s1285_s20   ;;  %s954_s19 = sphi %s1005_s19, %s1284_s19   ;;  %s950_s18 = sphi %s1003_s18, %s1283_s18  }
   0x7   : > { %p42_p0 = scmp.ne.s32.totalorder %s954_s19, %s950_s18  ;;  %p1267_p1 = scmp.eq.s32.totalorder %s1024_s22, 0 }
   0x8   : > { %p156_p3 = scmp.eq.s32.totalorder %s564_s23, 1  ;;  %p565_p5 = scmp.ge.s32.totalorder %s962_s21, 1 }
   0x9   : > { %p1033_p4 = por %p1267_p1, %p42_p0  ;;  %p163_p7 = scmp.lt.s32.totalorder %s962_s21, 3 }
   0xa   : > { %p1038_p6 = por %p156_p3, %p42_p0  ;;  %s964_s27 = smov [#allocation5]  }
   0xb   : > { %s1270_s24 = scalar_select %p1033_p4, 1, 0 }
   0xc   : > { %s1271_s25 = scalar_select %p1038_p6, 1, 0 }
   0xd   : > { %p1043_p8 = pnand %p565_p5, %p163_p7  ;;  %s175_s28 = sshll.u32 %s964_s27, 4  ;;  %s1047_s28 = int_to_ptr.vmem [resolvable:$true] %s175_s28 }
   0xe   : > { %s965_s30 = smov [#allocation7]   ;;  %s806_s9 = scalar_lea.hbm %s1262_s1, 2048 }
   0xf   : > { %p746_p9 = pneg %p1043_p8  ;;  %s191_s6 = sshll.u32 %s965_s30, 4  ;;  %s1058_s6 = int_to_ptr.vmem [resolvable:$true] %s191_s6 }
  0x10   : > { %p807_p12 = scmp.ne.s32.totalorder %s1262_s1, %s806_s9  ;;  %p813_p5 = scmp.lt.u32.totalorder %s806_s9, %s1262_s1 }
  0x11   : > { %p1054_p11 = pnand %p746_p9, %p1267_p1 }
  0x13   : > { %p808_p13 = pneg %p1054_p11 }
  0x15   : > { %p809_p0 = pnand %p808_p13, %p807_p12 }
  0x17   : > { %p810_p3 = pneg %p809_p0 }
  0x19   : > { %p815_p7 = pnand %p813_p5, %p810_p3 }
  0x1b   : > { %818 = shalt.err (!%p815_p7)
}
  0x1c   : > { %s819_s14 = scalar_lea.vmem %s1047_s28, 2048  ;;  %p827_p2 = scmp.lt.s32.totalorder %s1047_s28, %s1047_s28 }
  0x1d   : > { %p820_p9 = scmp.ne.s32.totalorder %s1047_s28, %s819_s14  ;;  %p828_p12 = scmp.lt.s32.totalorder %s819_s14, %s819_s14 }
  0x1f   : > { %p822_p10 = pnand %p820_p9, %p808_p13  ;;  %p829_p0 = por %p828_p12, %p827_p2 }
  0x21   : > { %p823_p1 = pneg %p822_p10 }
  0x23   : > { %p830_p6 = pnand %p829_p0, %p823_p1 }
  0x25   : > { %833 = shalt.err (!%p830_p6)
}
  0x26   : > { %s966_s15 = smov 128   ;;  %s967_s16 = smov 8  }
  0x27   : > { %749 = dma.hbm_to_vmem [thread:$0]  (!%p1054_p11), %s1262_s1, 2048, %s1047_s28, [#allocation6], %s966_s15, %s966_s15, %s967_s16  }
  0x28   : > { %s834_s7 = scalar_lea.hbm %s1264_s3, 2048 }
  0x29   : > { %p835_p2 = scmp.ne.s32.totalorder %s1264_s3, %s834_s7  ;;  %p841_p10 = scmp.lt.u32.totalorder %s834_s7, %s1264_s3 }
  0x2b   : > { %p837_p1 = pnand %p835_p2, %p808_p13 }
  0x2d   : > { %p838_p6 = pneg %p837_p1 }
  0x2f   : > { %p843_p3 = pnand %p841_p10, %p838_p6 }
  0x31   : > { %846 = shalt.err (!%p843_p3)
}
  0x32   : > { %s847_s28 = scalar_lea.vmem %s1058_s6, 2048  ;;  %p855_p12 = scmp.lt.s32.totalorder %s1058_s6, %s1058_s6 }
  0x33   : > { %p848_p5 = scmp.ne.s32.totalorder %s1058_s6, %s847_s28  ;;  %p856_p0 = scmp.lt.s32.totalorder %s847_s28, %s847_s28 }
  0x35   : > { %p850_p7 = pnand %p848_p5, %p808_p13  ;;  %p857_p2 = por %p856_p0, %p855_p12 }
  0x37   : > { %p851_p9 = pneg %p850_p7 }
  0x39   : > { %p858_p1 = pnand %p857_p2, %p851_p9 }
  0x3b   : > { %861 = shalt.err (!%p858_p1)
}
  0x3c   : > { %752 = dma.hbm_to_vmem [thread:$0]  (!%p1054_p11), %s1264_s3, 2048, %s1058_s6, [#allocation6], %s966_s15, %s966_s15, %s967_s16  }
  0x3d   : > { %s1113_s14 = sadd.s32 1, %s962_s21   ;;  %s29_s29 = sadd.s32 1, %s958_s20 }
  0x3e   : > { %s26_s17 = ssub.s32 %s962_s21, %s1113_s14  ;;  %p36_p13 = scmp.ne.s32.totalorder %s958_s20, %s954_s19 }
  0x3f   : > { %p27_p6 = scmp.eq.s32.totalorder %s26_s17, 0  ;;  %p37_p10 = scmp.eq.s32.totalorder %s962_s21, 0 }
  0x40   : > { %p1274_p3 = scmp.eq.s32.totalorder %s1024_s22, 1  ;;  %p763_p7 = scmp.lt.s32.totalorder %s962_s21, 2 }
  0x41   : > { %s1129_s27 = scalar_select %p27_p6, %s958_s20, %s29_s29  }
  0x42   : > { %p1123_p5 = por %p1274_p3, %p36_p13  ;;  %p38_p9 = por %p37_p10, %p36_p13 }
  0x43   : > { %s208_s30 = sand.u32 1, %s958_s20   ;;  %s570_s6 = sshll.u32 %s962_s21, 7 }
  0x44   : > { %s1275_s23 = scalar_select %p1123_p5, 1, 0 }
  0x45   : > { %s569_s7 = sshll.u32 %s208_s30, 3  ;;  %s1136_s8 = scalar_lea.hbm %s1261_s0, %s570_s6 }
  0x46   : > { %s212_s9 = scalar_lea.vmem [#allocation2], %s569_s7  ;;  %p1140_p11 = pnand %p763_p7, %p38_p9 }
  0x47   : > { %s219_s10 = sshll.u32 %s212_s9, 4  ;;  %s209_s28 = scalar_lea.sflag [#allocation3], %s208_s30  ;;  %s1138_s10 = int_to_ptr.vmem [resolvable:$true] %s219_s10 }
  0x48   : > { %s862_s12 = scalar_lea.hbm %s1136_s8, 128  ;;  %p864_p0 = pneg %p1140_p11 }
  0x49   : > { %p863_p12 = scmp.ne.s32.totalorder %s1136_s8, %s862_s12  ;;  %s867_s17 = scalar_lea.hbm %s1261_s0, 256 }
  0x4a   : > { %p868_p13 = scmp.lt.u32.totalorder %s1136_s8, %s1261_s0  ;;  %p869_p6 = scmp.lt.u32.totalorder %s867_s17, %s862_s12 }
  0x4b   : > { %p865_p2 = pnand %p864_p0, %p863_p12  ;;  %p871_p3 = scmp.lt.u32.totalorder %s862_s12, %s1136_s8 }
  0x4c   : > { %p870_p10 = por %p869_p6, %p868_p13 }
  0x4d   : > { %p866_p1 = pneg %p865_p2 }
  0x4e   : > { %p872_p7 = por %p871_p3, %p870_p10 }
  0x50   : > { %p873_p9 = pnand %p872_p7, %p866_p1 }
  0x52   : > { %876 = shalt.err (!%p873_p9)
}
  0x53   : > { %s877_s30 = scalar_lea.vmem %s1138_s10, 128  ;;  %s968_s15 = smov [#allocation2]  }
  0x54   : > { %p878_p12 = scmp.ne.s32.totalorder %s1138_s10, %s877_s30  ;;  %s882_s16 = sshll.u32 %s968_s15, 4  ;;  %s883_s16 = int_to_ptr.vmem [resolvable:$false] %s882_s16 }
  0x55   : > { %s884_s9 = scalar_lea.vmem %s883_s16, 256  ;;  %p885_p4 = scmp.lt.s32.totalorder %s1138_s10, %s883_s16 }
  0x56   : > { %p880_p2 = pnand %p878_p12, %p864_p0  ;;  %p886_p13 = scmp.lt.s32.totalorder %s884_s9, %s877_s30 }
  0x58   : > { %p881_p5 = pneg %p880_p2  ;;  %p887_p6 = por %p886_p13, %p885_p4 }
  0x5a   : > { %p888_p10 = pnand %p887_p6, %p881_p5 }
  0x5c   : > { %891 = shalt.err (!%p888_p10)
}
  0x5d   : > { %756 = dma.hbm_to_vmem [thread:$0]  (!%p1140_p11), %s1136_s8, 128, %s1138_s10, %s209_s28  }
  0x5e   : > { %228 = sbr.rel (%p1043_p8) target bundleno = 586 (0x24a), region = 40  ;;  %s1172_s12 = sand.u32 (!%p1043_p8), 1, %s954_s19  }
  0x5f   : > { %s572_s13 = sshll.u32 (!%p1043_p8), %s1172_s12, 3  ;;  %s231_s29 = scalar_lea.sflag (!%p1043_p8), [#allocation3], %s1172_s12 }
  0x60   : > { %s1178_s17 = scalar_lea.vmem (!%p1043_p8), [#allocation2], %s572_s13  ;;  %p1277_p4 = scmp.ne.s32.totalorder (!%p1043_p8), %s1270_s24, 0 }
  0x65   : > { %937 = dma.done.wait (%p1277_p4), %s231_s29, 128  }
  0x66   : > { %939 = vsyncadd (%p1277_p4), %s231_s29, 4294967168  ;;  %p1278_p5 = scmp.eq.s32.totalorder %s1024_s22, 0 }
  0x68   : > { %941 = dma.done.wait (%p1278_p5), [#allocation6], 4096   ;;  %p1279_p8 = pmov %p1278_p5 }
  0x69   : > { %v969_v0 = vmov 0.0|0.0   ;;  %vm970_vm0 = vmmov 0   ;;  %v971_v1 = vmov 0.0   ;;  %v270_v2 = vld [vmem:[#allocation5] sm:$0xff]  ;;  %v271_v3 = vld [vmem:[#allocation5 + $0x8] sm:$0xff]  ;;  %v272_v4 = vld [vmem:[#allocation5 + $0x10] sm:$0xff] }
  0x6a   : > { %943 = vsyncadd (%p1279_p8), [#allocation6], 4294963200  ;;  %686 = vmatprep.subr.bf16.mxu0 %v969_v0  ;;  %648 = vmatprep.mubr.msk.f32.mxu0 %vm970_vm0, %v971_v1  ;;  %v687_v5 = vpack.c.bf16 %v271_v3, %v270_v2  ;;  %v273_v6 = vld [vmem:[#allocation5 + $0x18] sm:$0xff]  ;;  %v274_v8 = vld [vmem:[#allocation5 + $0x20] sm:$0xff]  ;;  %s579_s11 = sshll.u32 %s1024_s22, 7  ;;  %s268_s28 = scalar_lea.vmem [#allocation8], %s572_s13 }
  0x6b   : > { %710 = vmatprep.subr.bf16.mxu1 %v969_v0  ;;  %683 = vmatprep.mubr.msk.f32.mxu1 %vm970_vm0, %v971_v1  ;;  %v690_v7 = vpack.c.bf16 %v273_v6, %v272_v4  ;;  %v275_v9 = vld [vmem:[#allocation5 + $0x28] sm:$0xff]  ;;  %v366_v10 = vld [vmem:[#allocation7] sm:$0xff]  ;;  %v368_v12 = vld [vmem:[#allocation7 + $0x10] sm:$0xff]  ;;  %s475_s7 = sshll.u32 %s268_s28, 4  ;;  %s1217_s15 = scalar_lea.hbm %s1266_s5, %s579_s11  ;;  %s1219_s7 = int_to_ptr.vmem [resolvable:$true] %s475_s7 }
  0x6c   : > { %688 = vmatpush3.bf16.msra.mxu0 %v687_v5  ;;  %v367_v11 = vld [vmem:[#allocation7 + $0x8] sm:$0xff]  ;;  %v369_v13 = vld [vmem:[#allocation7 + $0x18] sm:$0xff]  ;;  %v693_v14 = vpack.c.bf16 %v275_v9, %v274_v8  ;;  %v276_v16 = vld [vmem:[#allocation5 + $0x30] sm:$0xff]  ;;  %s462_s16 = scalar_lea.sflag [#allocation4], %s1172_s12  ;;  %s892_s9 = scalar_lea.vmem %s1219_s7, 128 }
  0x6d   : > { %689 = vmatprep.subr.bf16.mxu0 %v969_v0  ;;  %v711_v15 = vpack.c.bf16 %v367_v11, %v366_v10  ;;  %v277_v17 = vld [vmem:[#allocation5 + $0x38] sm:$0xff]  ;;  %v714_v18 = vpack.c.bf16 %v369_v13, %v368_v12  ;;  %v370_v19 = vld [vmem:[#allocation7 + $0x20] sm:$0xff]  ;;  %v371_v20 = vld [vmem:[#allocation7 + $0x28] sm:$0xff]  ;;  %p893_p11 = scmp.ne.s32.totalorder %s1219_s7, %s892_s9  ;;  %p1280_p0 = scmp.ne.s32.totalorder %s1275_s23, 0 }
  0x6e   : > { %v696_v21 = vpack.c.bf16 %v277_v17, %v276_v16  ;;  %v278_v22 = vld [vmem:[#allocation5 + $0x40] sm:$0xff]  ;;  %v279_v23 = vld [vmem:[#allocation5 + $0x48] sm:$0xff]  ;;  %v717_v24 = vpack.c.bf16 %v371_v20, %v370_v19  ;;  %v372_v25 = vld [vmem:[#allocation7 + $0x30] sm:$0xff]  ;;  %s972_s22 = smov [#allocation8]  }
  0x6f   : > { %712 = vmatpush3.bf16.msra.mxu1 %v711_v15  ;;  %v373_v26 = vld [vmem:[#allocation7 + $0x38] sm:$0xff]  ;;  %v699_v27 = vpack.c.bf16 %v279_v23, %v278_v22  ;;  %v280_v28 = vld [vmem:[#allocation5 + $0x50] sm:$0xff]  ;;  %v374_v31 = vld [vmem:[#allocation7 + $0x40] sm:$0xff]  ;;  %p894_p1 = pnand %p893_p11, %p1280_p0  ;;  %s896_s13 = sshll.u32 %s972_s22, 4  ;;  %s897_s13 = int_to_ptr.vmem [resolvable:$false] %s896_s13 }
  0x70   : > { %691 = vmatpush3.bf16.msra.mxu0 %v690_v7  ;;  %713 = vmatprep.subr.bf16.mxu1 %v969_v0  ;;  %v281_v29 = vld [vmem:[#allocation5 + $0x58] sm:$0xff]  ;;  %v720_v30 = vpack.c.bf16 %v373_v26, %v372_v25  ;;  %v375_v32 = vld [vmem:[#allocation7 + $0x48] sm:$0xff]  ;;  %v282_v34 = vld [vmem:[#allocation5 + $0x60] sm:$0xff]  ;;  %s898_s29 = scalar_lea.vmem %s897_s13, 256  ;;  %p899_p7 = scmp.lt.s32.totalorder %s1219_s7, %s897_s13 }
  0x71   : > { %692 = vmatprep.subr.bf16.mxu0 %v969_v0  ;;  %v702_v33 = vpack.c.bf16 %v281_v29, %v280_v28  ;;  %v283_v35 = vld [vmem:[#allocation5 + $0x68] sm:$0xff]  ;;  %v723_v36 = vpack.c.bf16 %v375_v32, %v374_v31  ;;  %v376_v37 = vld [vmem:[#allocation7 + $0x50] sm:$0xff]  ;;  %v377_v38 = vld [vmem:[#allocation7 + $0x58] sm:$0xff]  ;;  %p895_p3 = pneg %p894_p1  ;;  %p900_p9 = scmp.lt.s32.totalorder %s898_s29, %s892_s9 }
  0x72   : > { %v705_v39 = vpack.c.bf16 %v283_v35, %v282_v34  ;;  %v284_v40 = vld [vmem:[#allocation5 + $0x70] sm:$0xff]  ;;  %v285_v41 = vld [vmem:[#allocation5 + $0x78] sm:$0xff]  ;;  %v726_v42 = vpack.c.bf16 %v377_v38, %v376_v37  ;;  %v378_v43 = vld [vmem:[#allocation7 + $0x60] sm:$0xff] }
  0x73   : > { %715 = vmatpush3.bf16.msra.mxu1 %v714_v18  ;;  %v379_v44 = vld [vmem:[#allocation7 + $0x68] sm:$0xff]  ;;  %v708_v45 = vpack.c.bf16 %v285_v41, %v284_v40  ;;  %v269_v47 = vld [vmem:[%s1178_s17] sm:$0xff]  ;;  %p901_p12 = por %p900_p9, %p899_p7 }
  0x74   : > { %694 = vmatpush3.bf16.msra.mxu0 %v693_v14  ;;  %716 = vmatprep.subr.bf16.mxu1 %v969_v0  ;;  %v729_v46 = vpack.c.bf16 %v379_v44, %v378_v43  ;;  %v380_v48 = vld [vmem:[#allocation7 + $0x70] sm:$0xff]  ;;  %v381_v49 = vld [vmem:[#allocation7 + $0x78] sm:$0xff] }
  0x75   : > { %695 = vmatprep.subr.bf16.mxu0 %v969_v0  ;;  %v732_v50 = vpack.c.bf16 %v381_v49, %v380_v48  ;;  %v576_v51 = vld [vmem:[%s1263_s2] ss:$0 sm:$0xff]  ;;  %p902_p2 = pnand %p901_p12, %p895_p3 }
  0x76   : > { %v577_v57 = vld [vmem:[%s1265_s4] ss:$0 sm:$0xff] }
  0x77   : > { %718 = vmatpush3.bf16.msra.mxu1 %v717_v24 }
  0x78   : > { %697 = vmatpush3.bf16.msra.mxu0 %v696_v21  ;;  %719 = vmatprep.subr.bf16.mxu1 %v969_v0 }
  0x79   : > { %698 = vmatprep.subr.bf16.mxu0 %v969_v0 }
  0x7b   : > { %721 = vmatpush3.bf16.msra.mxu1 %v720_v30 }
  0x7c   : > { %700 = vmatpush3.bf16.msra.mxu0 %v699_v27  ;;  %722 = vmatprep.subr.bf16.mxu1 %v969_v0 }
  0x7d   : > { %701 = vmatprep.subr.bf16.mxu0 %v969_v0 }
  0x7f   : > { %724 = vmatpush3.bf16.msra.mxu1 %v723_v36 }
  0x80   : > { %703 = vmatpush3.bf16.msra.mxu0 %v702_v33  ;;  %725 = vmatprep.subr.bf16.mxu1 %v969_v0 }
  0x81   : > { %704 = vmatprep.subr.bf16.mxu0 %v969_v0 }
  0x83   : > { %727 = vmatpush3.bf16.msra.mxu1 %v726_v42 }
  0x84   : > { %706 = vmatpush3.bf16.msra.mxu0 %v705_v39  ;;  %728 = vmatprep.subr.bf16.mxu1 %v969_v0 }
  0x85   : > { %707 = vmatprep.subr.bf16.mxu0 %v969_v0 }
  0x87   : > { %730 = vmatpush3.bf16.msra.mxu1 %v729_v46 }
  0x88   : > { %709 = vmatpush3.bf16.msra.mxu0 %v708_v45  ;;  %731 = vmatprep.subr.bf16.mxu1 %v969_v0 }
  0x8b   : > { %649 = vmatmul.mubr.f32.vlgmr.msra.gmra.mrb[0].mxu0 %v269_v47  ;;  %733 = vmatpush3.bf16.msra.mxu1 %v732_v50 }
 0x15e   : > { %v359_v52 = vpop.f32.mrb[0].mxu0 }
 0x15f   : > { %v360_v53 = vadd.f32 %v576_v51, %v359_v52  ;;  %v650_v54 = vpop.f32.mrb[1].mxu0 }
 0x161   : > { %v364_v55 = vmul.f32 0.01, %v360_v53  ;;  %vm363_vm1 = vcmp.gt.f32.partialorder %v360_v53, 0.0 }
 0x163   : > { %v365_v56 = vsel %vm363_vm1, %v360_v53, %v364_v55 }
 0x164   : > { %684 = vmatmul.mubr.f32.vlgmr.msra.gmra.mrb[0].mxu1 %v365_v56 }
 0x237   : > { %v455_v58 = vpop.f32.mrb[0].mxu1 }
 0x238   : > { %v456_v59 = vadd.f32 %v577_v57, %v455_v58  ;;  %v685_v60 = vpop.f32.mrb[1].mxu1 }
 0x23a   : > { %v459_v61 = vadd.f32 %v456_v59, %v269_v47 }
 0x23c   : > { %460 = vst [vmem:[%s268_s28] sm:$0xff] %v459_v61 }
 0x23d   : > { %905 = shalt.err (!%p902_p2)
}
 0x23e   : > { %s906_s12 = scalar_lea.hbm %s1217_s15, 128  ;;  %s910_s26 = scalar_lea.hbm %s1266_s5, 256 }
 0x23f   : > { %p907_p13 = scmp.ne.s32.totalorder %s1217_s15, %s906_s12  ;;  %p911_p4 = scmp.lt.u32.totalorder %s1217_s15, %s1266_s5 }
 0x240   : > { %p912_p5 = scmp.lt.u32.totalorder %s910_s26, %s906_s12  ;;  %p914_p11 = scmp.lt.u32.totalorder %s906_s12, %s1217_s15 }
 0x241   : > { %p908_p6 = pnand %p907_p13, %p1280_p0 }
 0x242   : > { %p913_p8 = por %p912_p5, %p911_p4 }
 0x243   : > { %p909_p10 = pneg %p908_p6 }
 0x244   : > { %p915_p1 = por %p914_p11, %p913_p8 }
 0x246   : > { %p916_p3 = pnand %p915_p1, %p909_p10 }
 0x248   : > { %919 = shalt.err (!%p916_p3)
}
 0x249   : > { %744 = dma.vmem_to_hbm [thread:$0]  (%p1280_p0), %s1219_s7, 128, %s1217_s15, %s462_s16  }
 0x24a PF: > { %s487_s11 = sand.u32 1, %s950_s18   ;;  %p1281_p7 = scmp.ne.s32.totalorder %s1271_s25, 0 }
 0x24b   : > { %p1282_p9 = scmp.ge.s32.totalorder %s962_s21, 2  ;;  %s488_s28 = scalar_lea.sflag [#allocation4], %s487_s11 }
 0x24d   : > { %p758_p12 = pnand %p1282_p9, %p1281_p7 }
 0x24f   : > { %945 = dma.done.wait (!%p758_p12), %s488_s28, 128  }
 0x250   : > { %947 = vsyncadd (!%p758_p12), %s488_s28, 4294967168  ;;  %p19_p2 = scmp.ge.s32.totalorder %s1113_s14, 4   ;;  %s1283_s18 = smov %s954_s19 }
 0x251   : > { %s1284_s19 = smov %s958_s20  ;;  %s1285_s20 = smov %s1129_s27 }
 0x252   : > { %s1286_s21 = smov %s1113_s14  ;;  %21 = sbr.rel (!%p19_p2) target bundleno = 6 (0x6), region = 93 }
 0x259   :  { %493 = vsyncpa [#allocation3], 1 }
 0x25a   :  { %495 = vsyncpa [#allocation3 + $0x1], 1 }
 0x25b   :  { %496 = vsyncpa [#allocation6], 1 }
 0x25c   :  { %497 = vsyncpa [#allocation4], 1 }
 0x25d   :  { %499 = vsyncpa [#allocation4 + $0x1], 1 }

</bundles_post_ra>
